<compile_context>
chip_gen: v5e
topology: v5e:2x2
jax: 0.10.0
libtpu: 0.0.40
codegen_flags: <defaults>
</compile_context>

<pallas_src>
import math

import jax
import jax.numpy as jnp
from jax.experimental import pallas as pl
from jax.experimental.pallas import tpu as pltpu

# Loss hyper-parameters (from AdaptiveWingLoss.__init__ defaults).
OMEGA = 14.0
THETA = 0.5
EPSILON = 1.0
ALPHA = 2.1

_LANES = 128
_ROW_GRAIN = 16           # legal sublane granularity for f32 (8) and bf16/f16 (16)
_MAX_TILE_ROWS = 2048     # (2048,128) f32 = 1 MiB per input per pipeline buffer

# Compile-time constants (folded into the kernel).
_LOG_T = math.log(THETA / EPSILON)   # log(theta/epsilon)
_INV_T = EPSILON / THETA             # (theta/epsilon)^-1
_INV_OMEGA = 1.0 / OMEGA
_TINY = 1e-30                        # log() guard; keeps 0^e == 0 for e>0 (and 0^0 == 1)


def _awing_partial_kernel(pred_ref, tgt_ref, out_ref):
    """Accumulate per-position partial loss sums into a VMEM-resident out block."""
    j = pl.program_id(1)

    @pl.when(j == 0)
    def _():
        out_ref[...] = jnp.zeros_like(out_ref)

    y = tgt_ref[...].astype(jnp.float32)
    y_hat = pred_ref[...].astype(jnp.float32)

    delta = jnp.abs(y - y_hat)
    expo = ALPHA - y                              # (alpha - y)
    in_branch1 = delta < THETA

    # Shared transcendental chain: 4 EUP ops/element (log, exp, log, recip)
    # instead of 6.  Select the log argument so a single exp yields either
    # (delta/omega)^expo (branch 1) or (theta/eps)^expo (branch 2), and a
    # single log(1+q) serves both omega*log(1+.) terms.
    d_safe = jnp.maximum(delta, _TINY)            # avoid log(0) -> -inf
    r = jnp.where(in_branch1, jnp.log(d_safe * _INV_OMEGA), _LOG_T)
    q = jnp.exp(expo * r)                         # b1: (d/w)^e   | b2: t^e
    log1q = jnp.log(1.0 + q)                      # b1/b2: log(1 + .)
    inv1q = 1.0 / (1.0 + q)                       # only consumed in branch 2

    # Branch 2:  A*delta - C  ==  A*(delta - theta) + omega*log(1 + t^e)
    #   A = omega * (1/(1+t^e)) * expo * t^(e-1) / eps,   t^(e-1) = q * (1/t)
    A = (OMEGA / EPSILON) * inv1q * expo * (q * _INV_T)
    loss = OMEGA * log1q + jnp.where(in_branch1, 0.0, A * (delta - THETA))

    # Plain vector add into the resident output block (no cross-lane reduce,
    # no masked narrow stores on the hot path).
    out_ref[...] += loss


def adaptive_wing_loss(pred, target):
    """pred, target: BxNxHxW arrays (any float dtype). Returns scalar f32 loss."""
    assert pred.shape == target.shape
    n_elems = int(pred.size)

    # Tiling: flatten to a lane-dense (rows_total, 128) slab.
    rows = pl.cdiv(n_elems, _LANES)
    rows_g = pl.cdiv(rows, _ROW_GRAIN) * _ROW_GRAIN
    # Leading "parallel" chunk axis (2 chunks when big enough -> both v7x TCs).
    num_chunks = 2 if rows_g >= 2 * _MAX_TILE_ROWS else 1
    steps = pl.cdiv(rows_g, num_chunks * _MAX_TILE_ROWS)
    tile_rows = pl.cdiv(rows_g, num_chunks * steps * _ROW_GRAIN) * _ROW_GRAIN
    rows_total = num_chunks * steps * tile_rows
    pad = rows_total * _LANES - n_elems

    # Keep the caller's dtype (bf16 stays bf16 -> half the HBM traffic); cast
    # to f32 inside the kernel.
    flat_p = pred.reshape(-1)
    flat_t = target.reshape(-1)
    if pad:
        # Zero padding contributes exactly 0 to the loss sum:
        # delta = 0 < theta and (0/omega)^(alpha-0) -> 0  =>  omega*log(1) = 0.
        flat_p = jnp.pad(flat_p, (0, pad))
        flat_t = jnp.pad(flat_t, (0, pad))

    p2 = flat_p.reshape(rows_total, _LANES)
    t2 = flat_t.reshape(rows_total, _LANES)

    in_spec = pl.BlockSpec((tile_rows, _LANES), lambda i, j: (i * steps + j, 0))
    out_spec = pl.BlockSpec((tile_rows, _LANES), lambda i, j: (i, 0))

    partials = pl.pallas_call(
        _awing_partial_kernel,
        out_shape=jax.ShapeDtypeStruct((num_chunks * tile_rows, _LANES), jnp.float32),
        grid_spec=pltpu.PrefetchScalarGridSpec(
            num_scalar_prefetch=0,
            grid=(num_chunks, steps),        # reduction axis last
            in_specs=[in_spec, in_spec],
            out_specs=out_spec,
        ),
        compiler_params=pltpu.CompilerParams(
            dimension_semantics=("parallel", "arbitrary"),
            vmem_limit_bytes=32 * 1024 * 1024,
        ),
    )(p2, t2)

    # Glue: tiny final reduction + mean over the true (unpadded) element count.
    # TODO(synk): the boolean-mask indexing of the PyTorch forward is replaced
    # by an equivalent branchless select; the scalar mean stays in the wrapper.
    return jnp.sum(partials, dtype=jnp.float32) / jnp.float32(n_elems)


def _reference_awing_loss(pred, target):
    # Pure-JAX reference mirroring the PyTorch forward (for sanity check).
    y = target.astype(jnp.float32)
    y_hat = pred.astype(jnp.float32)
    delta = jnp.abs(y - y_hat)
    expo = ALPHA - y
    loss1 = OMEGA * jnp.log(1.0 + jnp.power(delta / OMEGA, expo))
    t = THETA / EPSILON
    pow_t = jnp.power(t, expo)
    A = OMEGA * (1.0 / (1.0 + pow_t)) * expo * jnp.power(t, expo - 1.0) * (1.0 / EPSILON)
    C = THETA * A - OMEGA * jnp.log(1.0 + pow_t)
    loss2 = A * delta - C
    loss = jnp.where(delta < THETA, loss1, loss2)
    return jnp.sum(loss) / loss.size


if __name__ == "__main__":
    key = jax.random.PRNGKey(0)
    kp, kt = jax.random.split(key)
    B, N, H, W = 2, 4, 16, 16
    # target is a heatmap-like tensor in [0,1]; pred is a noisy prediction.
    target = jax.random.uniform(kt, (B, N, H, W), dtype=jnp.float32)
    pred = target + 0.3 * jax.random.normal(kp, (B, N, H, W), dtype=jnp.float32)

    out = jax.block_until_ready(adaptive_wing_loss(pred, target))
    ref = jax.block_until_ready(_reference_awing_loss(pred, target))
    assert jnp.allclose(out, ref, rtol=1e-5, atol=1e-6), (out, ref)

    # Also exercise the padded (non-multiple-of-2048) path once.
    kt2, kp2 = jax.random.split(kt)
    tgt2 = jax.random.uniform(kt2, (2, 3, 17, 19), dtype=jnp.float32)
    prd2 = tgt2 + 0.5 * jax.random.normal(kp2, (2, 3, 17, 19), dtype=jnp.float32)
    out2 = jax.block_until_ready(adaptive_wing_loss(prd2, tgt2))
    ref2 = jax.block_until_ready(_reference_awing_loss(prd2, tgt2))
    assert jnp.allclose(out2, ref2, rtol=1e-5, atol=1e-6), (out2, ref2)

    print("KERNEL_OK")
</pallas_src>

<mosaic_0001>
module attributes {stable_mosaic.version = 11 : i64} {
  func.func @_awing_partial_kernel(%arg0: i32, %arg1: i32, %arg2: memref<16x128xf32, #tpu.memory_space<vmem>>, %arg3: memref<16x128xf32, #tpu.memory_space<vmem>>, %arg4: memref<16x128xf32, #tpu.memory_space<vmem>>) attributes {dimension_semantics = [#tpu.dimension_semantics<parallel>, #tpu.dimension_semantics<arbitrary>], iteration_bounds = array<i64: 1, 1>, scalar_prefetch = 0 : i64, scratch_operands = 0 : i64, tpu.core_type = #tpu.core_type<tc>, window_params = [{transform_indices = @transform_0, window_bounds = array<i64: 16, 128>}, {transform_indices = @transform_1, window_bounds = array<i64: 16, 128>}, {transform_indices = @transform_2, window_bounds = array<i64: 16, 128>}]} {
    %c0_i32 = arith.constant 0 : i32
    %0 = arith.cmpi eq, %arg1, %c0_i32 : i32
    %1 = arith.extui %0 : i1 to i32
    %c0_i32_0 = arith.constant 0 : i32
    %2 = arith.cmpi ne, %1, %c0_i32_0 : i32
    scf.if %2 {
      %cst_20 = arith.constant 0.000000e+00 : f32
      %44 = vector.broadcast %cst_20 : f32 to vector<16x128xf32>
      %c0_21 = arith.constant 0 : index
      %c0_22 = arith.constant 0 : index
      %45 = vector.load %arg4[%c0_21, %c0_22] : memref<16x128xf32, #tpu.memory_space<vmem>>, vector<16x128xf32>
      tpu.vector_store %arg4[%c0_21, %c0_22], %44 {strides = array<i32>} : memref<16x128xf32, #tpu.memory_space<vmem>>, vector<16x128xf32>,
    } else {
    }
    %c0 = arith.constant 0 : index
    %c0_1 = arith.constant 0 : index
    %3 = vector.load %arg3[%c0, %c0_1] : memref<16x128xf32, #tpu.memory_space<vmem>>, vector<16x128xf32>
    %c0_2 = arith.constant 0 : index
    %c0_3 = arith.constant 0 : index
    %4 = vector.load %arg2[%c0_2, %c0_3] : memref<16x128xf32, #tpu.memory_space<vmem>>, vector<16x128xf32>
    %5 = arith.subf %3, %4 : vector<16x128xf32>
    %6 = math.absf %5 : vector<16x128xf32>
    %cst = arith.constant 2.100000e+00 : f32
    %7 = vector.broadcast %cst : f32 to vector<16x128xf32>
    %8 = arith.subf %7, %3 : vector<16x128xf32>
    %cst_4 = arith.constant 5.000000e-01 : f32
    %9 = vector.broadcast %cst_4 : f32 to vector<16x128xf32>
    %10 = arith.cmpf olt, %6, %9 : vector<16x128xf32>
    %cst_5 = arith.constant 1.000000e-30 : f32
    %11 = vector.broadcast %cst_5 : f32 to vector<16x128xf32>
    %12 = arith.maximumf %6, %11 : vector<16x128xf32>
    %cst_6 = arith.constant 0.0714285746 : f32
    %13 = vector.broadcast %cst_6 : f32 to vector<16x128xf32>
    %14 = arith.mulf %12, %13 : vector<16x128xf32>
    %15 = math.log %14 : vector<16x128xf32>
    %cst_7 = arith.constant -0.693147182 : f32
    %16 = vector.broadcast %cst_7 : f32 to vector<16x128xf32>
    %17 = arith.select %10, %15, %16 : vector<16x128xi1>, vector<16x128xf32>
    %18 = arith.mulf %8, %17 : vector<16x128xf32>
    %19 = math.exp %18 : vector<16x128xf32>
    %cst_8 = arith.constant 1.000000e+00 : f32
    %20 = vector.broadcast %cst_8 : f32 to vector<16x128xf32>
    %21 = arith.addf %20, %19 : vector<16x128xf32>
    %22 = math.log %21 : vector<16x128xf32>
    %cst_9 = arith.constant 1.000000e+00 : f32
    %23 = vector.broadcast %cst_9 : f32 to vector<16x128xf32>
    %24 = arith.addf %23, %19 : vector<16x128xf32>
    %cst_10 = arith.constant 1.000000e+00 : f32
    %25 = vector.broadcast %cst_10 : f32 to vector<16x128xf32>
    %26 = arith.divf %25, %24 : vector<16x128xf32>
    %cst_11 = arith.constant 1.400000e+01 : f32
    %27 = vector.broadcast %cst_11 : f32 to vector<16x128xf32>
    %28 = arith.mulf %27, %26 : vector<16x128xf32>
    %29 = arith.mulf %28, %8 : vector<16x128xf32>
    %cst_12 = arith.constant 2.000000e+00 : f32
    %30 = vector.broadcast %cst_12 : f32 to vector<16x128xf32>
    %31 = arith.mulf %19, %30 : vector<16x128xf32>
    %32 = arith.mulf %29, %31 : vector<16x128xf32>
    %cst_13 = arith.constant 1.400000e+01 : f32
    %33 = vector.broadcast %cst_13 : f32 to vector<16x128xf32>
    %34 = arith.mulf %33, %22 : vector<16x128xf32>
    %cst_14 = arith.constant 5.000000e-01 : f32
    %35 = vector.broadcast %cst_14 : f32 to vector<16x128xf32>
    %36 = arith.subf %6, %35 : vector<16x128xf32>
    %37 = arith.mulf %32, %36 : vector<16x128xf32>
    %cst_15 = arith.constant 0.000000e+00 : f32
    %38 = vector.broadcast %cst_15 : f32 to vector<16x128xf32>
    %39 = arith.select %10, %38, %37 : vector<16x128xi1>, vector<16x128xf32>
    %40 = arith.addf %34, %39 : vector<16x128xf32>
    %c0_16 = arith.constant 0 : index
    %c0_17 = arith.constant 0 : index
    %41 = vector.load %arg4[%c0_16, %c0_17] : memref<16x128xf32, #tpu.memory_space<vmem>>, vector<16x128xf32>
    %42 = arith.addf %41, %40 : vector<16x128xf32>
    %c0_18 = arith.constant 0 : index
    %c0_19 = arith.constant 0 : index
    %43 = vector.load %arg4[%c0_18, %c0_19] : memref<16x128xf32, #tpu.memory_space<vmem>>, vector<16x128xf32>
    tpu.vector_store %arg4[%c0_18, %c0_19], %42 {strides = array<i32>} : memref<16x128xf32, #tpu.memory_space<vmem>>, vector<16x128xf32>,
    return
  }
  func.func @transform_0(%arg0: i32, %arg1: i32) -> (i32, i32) {
    %c1_i32 = arith.constant 1 : i32
    %0 = arith.muli %arg0, %c1_i32 : i32
    %1 = arith.addi %0, %arg1 : i32
    %c0_i32 = arith.constant 0 : i32
    %c0_i32_0 = arith.constant 0 : i32
    return %1, %c0_i32 : i32, i32
  }
  func.func @transform_1(%arg0: i32, %arg1: i32) -> (i32, i32) {
    %c1_i32 = arith.constant 1 : i32
    %0 = arith.muli %arg0, %c1_i32 : i32
    %1 = arith.addi %0, %arg1 : i32
    %c0_i32 = arith.constant 0 : i32
    %c0_i32_0 = arith.constant 0 : i32
    return %1, %c0_i32 : i32, i32
  }
  func.func @transform_2(%arg0: i32, %arg1: i32) -> (i32, i32) {
    %c0_i32 = arith.constant 0 : i32
    %c0_i32_0 = arith.constant 0 : i32
    return %arg0, %c0_i32 : i32, i32
  }
}

</mosaic_0001>

<bundles_post_ra>
// kernel: tpu_custom_call.1
= control target key start
LH: loop header
LB: loop body
LE: loop exit
PB: predicated region body
PF: predicated region fallthrough
CT: control target
= control target key end

     0   :  { %7 = vsyncpa [#allocation3], 0  ;;  %s336_s0 = inlined_call_operand.hbm [shape: f32[16,128], index: 0, kind: input, shape index: {}]   ;;  %s337_s1 = inlined_call_operand.hbm [shape: f32[16,128], index: 1, kind: input, shape index: {}]   ;;  %s338_s2 = inlined_call_operand.hbm [shape: f32[16,128], index: 2, kind: output, shape index: {}]  }
   0x1   :  { %8 = vsyncpa [#allocation6], 0 }
   0x2   :  { %9 = vsyncpa [#allocation4], 0  ;;  %s18_s11 = sshll.u32 %s336_s0, 4  ;;  %s272_s12 = smov [#allocation2]   ;;  %s19_s11 = int_to_ptr.hbm [resolvable:$true] %s18_s11 }
   0x3   :  { %s20_s13 = sshll.u32 %s272_s12, 4  ;;  %s35_s16 = sshll.u32 %s337_s1, 4  ;;  %s21_s13 = int_to_ptr.vmem [resolvable:$true] %s20_s13  ;;  %s36_s16 = int_to_ptr.hbm [resolvable:$true] %s35_s16 }
   0x4   :  { %s273_s17 = smov 128   ;;  %s274_s18 = smov 8  }
   0x5   :  { %26 = dma.hbm_to_vmem [thread:$0]  %s19_s11, 256, %s21_s13, [#allocation3], %s273_s17, %s273_s17, %s274_s18  }
   0x6   :  { %s275_s19 = smov [#allocation5]  }
   0x7   :  { %s37_s20 = sshll.u32 %s275_s19, 4  ;;  %s38_s20 = int_to_ptr.vmem [resolvable:$true] %s37_s20 }
   0x8   :  { %43 = dma.hbm_to_vmem [thread:$0]  %s36_s16, 256, %s38_s20, [#allocation6], %s273_s17, %s273_s17, %s274_s18  }
   0x9   :  { %266 = dma.done.wait [#allocation3], 256  }
   0xa   :  { %267 = vsyncadd [#allocation3], 4294967040 }
   0xb   :  { %268 = dma.done.wait [#allocation6], 256  }
   0xc   :  { %269 = vsyncadd [#allocation6], 4294967040  ;;  %v304_v0 = vld [vmem:[#allocation5] sm:$0xff]  ;;  %v64_v1 = vld [vmem:[#allocation2] sm:$0xff]  ;;  %s276_s0 = smov [#allocation7]   ;;  %s156_s23 = sshll.u32 %s338_s2, 4  ;;  %s157_s23 = int_to_ptr.hbm [resolvable:$true] %s156_s23 }
   0xd   :  { %v306_v2 = vld [vmem:[#allocation5 + $0x8] sm:$0xff]  ;;  %v66_v3 = vsub.f32 %v304_v0, %v64_v1  ;;  %v65_v4 = vld [vmem:[#allocation2 + $0x8] sm:$0xff]  ;;  %v70_v13 = vsub.f32 2.1, %v304_v0  ;;  %s154_s1 = sshll.u32 %s276_s0, 4  ;;  %s155_s1 = int_to_ptr.vmem [resolvable:$true] %s154_s1 }
   0xe   :  { %v67_v5 = vsub.f32 %v306_v2, %v65_v4  ;;  %v71_v16 = vsub.f32 2.1, %v306_v2 }
   0xf   :  { %v310_v6 = vand.u32 2147483647, %v66_v3 }
  0x10   :  { %v312_v7 = vand.u32 2147483647, %v67_v5 }
  0x11   :  { %v74_v8 = vmax.f32 %v310_v6, 1e-30  ;;  %vm72_vm0 = vcmp.lt.f32.partialorder %v310_v6, 0.5  ;;  %v170_v54 = vadd.f32 -0.5, %v310_v6 }
  0x12   :  { %v75_v9 = vmax.f32 %v312_v7, 1e-30  ;;  %vm73_vm1 = vcmp.lt.f32.partialorder %v312_v7, 0.5  ;;  %v171_v60 = vadd.f32 -0.5, %v312_v7 }
  0x13   :  { %v76_v10 = vmul.f32 0.071428575, %v74_v8 }
  0x14   :  { %v77_v11 = vmul.f32 0.071428575, %v75_v9 }
  0x15   :  { %178 = vlog2.f32 %v76_v10 }
  0x16   :  { %180 = vlog2.f32 %v77_v11 }
  0x1b   :  { %v179_v12 = vpop.eup %178 }
  0x1c   :  { %v181_v14 = vpop.eup %180  ;;  %v79_v15 = vmul.f32 0.6931472, %v179_v12 }
  0x1d   :  { %v81_v17 = vmul.f32 0.6931472, %v181_v14 }
  0x1e   :  { %v82_v18 = vsel %vm72_vm0, %v79_v15, -0.6931472 }
  0x1f   :  { %v84_v19 = vmul.f32 %v82_v18, %v70_v13  ;;  %v83_v20 = vsel %vm73_vm1, %v81_v17, -0.6931472 }
  0x20   :  { %v85_v21 = vmul.f32 %v83_v20, %v71_v16 }
  0x21   :  { %v86_v22 = vmul.f32 1.442695, %v84_v19 }
  0x22   :  { %v88_v23 = vmul.f32 1.442695, %v85_v21 }
  0x23   :  { %182 = vpow2.f32 %v86_v22 }
  0x24   :  { %184 = vpow2.f32 %v88_v23 }
  0x29   :  { %v183_v24 = vpop.eup %182 }
  0x2a   :  { %v185_v25 = vpop.eup %184  ;;  %v90_v26 = vadd.f32 1.0, %v183_v24  ;;  %v130_v49 = vmul.f32 2.0, %v183_v24 }
  0x2b   :  { %v91_v27 = vadd.f32 1.0, %v185_v25  ;;  %v131_v56 = vmul.f32 2.0, %v185_v25 }
  0x2c   :  { %186 = vrcp.f32 %v90_v26  ;;  %vm101_vm2 = vweird.f32 %v90_v26  ;;  %v107_v31 = vand.u32 2147483648, %v90_v26  ;;  %v105_v33 = vand.u32 2147483647, %v90_v26 }
  0x2d   :  { %188 = vrcp.f32 %v91_v27  ;;  %vm116_vm4 = vweird.f32 %v91_v27  ;;  %v120_v35 = vand.u32 2147483647, %v91_v27  ;;  %v122_v36 = vand.u32 2147483648, %v91_v27 }
  0x2e   :  { %190 = vlog2.f32 %v90_v26  ;;  %v108_v39 = vor.u32 1.1754944e-38, %v107_v31  ;;  %vm106_vm7 = vcmp.eq.f32.partialorder %v105_v33, 8.507059e+37 }
  0x2f   :  { %192 = vlog2.f32 %v91_v27  ;;  %v123_v43 = vor.u32 1.1754944e-38, %v122_v36  ;;  %vm121_vm9 = vcmp.eq.f32.partialorder %v120_v35, 8.507059e+37 }
  0x32   :  { %v187_v28 = vpop.eup %186 }
  0x33   :  { %v97_v29 = vmul.f32 %v187_v28, %v90_v26  ;;  %v189_v30 = vpop.eup %188  ;;  %vm102_vm3 = vweird.f32 %v187_v28 }
  0x34   :  { %v112_v34 = vmul.f32 %v189_v30, %v91_v27  ;;  %vm117_vm5 = vweird.f32 %v189_v30  ;;  %vm103_vm6 = vmor %vm101_vm2, %vm102_vm3  ;;  %v191_v42 = vpop.eup %190 }
  0x35   :  { %v98_v32 = vsub.f32 1.0, %v97_v29  ;;  %vm118_vm8 = vmor %vm116_vm4, %vm117_vm5  ;;  %v193_v47 = vpop.eup %192  ;;  %v93_v51 = vmul.f32 0.6931472, %v191_v42 }
  0x36   :  { %v113_v38 = vsub.f32 1.0, %v112_v34  ;;  %v95_v57 = vmul.f32 0.6931472, %v193_v47 }
  0x37   :  { %v99_v37 = vmul.f32 %v187_v28, %v98_v32  ;;  %v134_v61 = vmul.f32 14.0, %v93_v51 }
  0x38   :  { %v114_v41 = vmul.f32 %v189_v30, %v113_v38  ;;  %v135_v0 = vmul.f32 14.0, %v95_v57 }
  0x39   :  { %v100_v40 = vadd.f32 %v187_v28, %v99_v37 }
  0x3a   :  { %v115_v45 = vadd.f32 %v189_v30, %v114_v41 }
  0x3b   :  { %v104_v44 = vsel %vm103_vm6, %v187_v28, %v100_v40 }
  0x3c   :  { %v109_v46 = vsel %vm106_vm7, %v108_v39, %v104_v44  ;;  %v119_v50 = vsel %vm118_vm8, %v189_v30, %v115_v45 }
  0x3d   :  { %v126_v48 = vmul.f32 14.0, %v109_v46  ;;  %v124_v52 = vsel %vm121_vm9, %v123_v43, %v119_v50 }
  0x3e   :  { %v127_v55 = vmul.f32 14.0, %v124_v52 }
  0x3f   :  { %v128_v53 = vmul.f32 %v126_v48, %v70_v13 }
  0x40   :  { %v129_v59 = vmul.f32 %v127_v55, %v71_v16 }
  0x41   :  { %v132_v58 = vmul.f32 %v130_v49, %v128_v53 }
  0x42   :  { %v133_v63 = vmul.f32 %v131_v56, %v129_v59 }
  0x43   :  { %v138_v62 = vmul.f32 %v170_v54, %v132_v58 }
  0x44   :  { %v139_v2 = vmul.f32 %v171_v60, %v133_v63 }
  0x45   :  { %v140_v1 = vsel %vm72_vm0, 0.0, %v138_v62 }
  0x46   :  { %v142_v3 = vadd.f32 %v140_v1, %v134_v61  ;;  %v141_v4 = vsel %vm73_vm1, 0.0, %v139_v2 }
  0x47   :  { %v143_v5 = vadd.f32 %v141_v4, %v135_v0 }
  0x48   :  { %148 = vst [vmem:[#allocation7] sm:$0xff] %v142_v3 }
  0x49   :  { %149 = vst [vmem:[#allocation7 + $0x8] sm:$0xff] %v143_v5 }
  0x4a   :  { %162 = dma.vmem_to_hbm [thread:$0]  %s155_s1, 256, %s157_s23, [#allocation4], %s273_s17, %s273_s17, %s274_s18  }
  0x4b   :  { %270 = dma.done.wait [#allocation4], 256  }
  0x4c   :  { %271 = vsyncadd [#allocation4], 4294967040 }
  0x4d   :  { %167 = vsyncpa [#allocation3], 1 }
  0x4e   :  { %168 = vsyncpa [#allocation6], 1 }
  0x4f   :  { %169 = vsyncpa [#allocation4], 1 }

</bundles_post_ra>
